<compile_context>
chip_gen: v5e
topology: v5e:2x2
jax: 0.10.0
libtpu: 0.0.40
codegen_flags: <defaults>
</compile_context>

<pallas_src>
import math
import functools

import jax
import jax.numpy as jnp
from jax.experimental import pallas as pl
from jax.experimental.pallas import tpu as pltpu


def _round_up(x, m):
    return ((x + m - 1) // m) * m


def convnet_kernel(im2col_ref, p_ref, out_ref, *,
                   num_filters, pool_size, l_pooled, h1, h2, kdim,
                   r_wc, r_w1, r_w2, r_vec):
    nf = num_filters

    # --- carve parameter segments out of the single packed VMEM buffer (static, aligned slices) ---
    wconv = p_ref[r_wc:r_wc + kdim, 0:nf]              # (5*fs, nf)
    w1    = p_ref[r_w1:r_w1 + l_pooled * nf, 0:h1]     # (lp*nf, h1)   (columns permuted in wrapper)
    w2    = p_ref[r_w2:r_w2 + h1, 0:h2]                # (h1, h2)
    vec   = p_ref[r_vec:r_vec + 8, :]                  # (8, 128) bias / small-vector block
    bconv = vec[0:1, 0:nf]                             # (1, nf)
    b1    = vec[1:2, 0:h1]                             # (1, h1)
    b2    = vec[2:3, 0:h2]                             # (1, h2)
    w3    = vec[3:4, 0:h2]                             # (1, h2)
    b3    = vec[4:5, 0:1]                              # (1, 1)

    # --- Conv1d(in=5, out=nf, kernel_size=fs) as a single im2col matmul, lane-dense over filters ---
    conv = jnp.dot(im2col_ref[...], wconv, preferred_element_type=jnp.float32) + bconv  # (l_conv, nf)
    conv = jnp.maximum(conv, 0.0)                                                       # ReLU

    # --- MaxPool1d(pool_size, stride=pool_size, floor mode) fused with torch's flatten ---
    # each pool window = sublane-group max -> full (1, nf) row; lane-concat -> flat (1, lp*nf)
    pooled_rows = [
        jnp.max(conv[p * pool_size:(p + 1) * pool_size, :], axis=0, keepdims=True)
        for p in range(l_pooled)
    ]
    flat = jnp.concatenate(pooled_rows, axis=1)        # (1, lp*nf), order p*nf + f

    # Dropout(p=0.5): eval-mode identity.
    # TODO(synk): training-mode stochastic dropout (torch RNG semantics) not reproduced.

    # --- fc1 / fc2 as single lane-dense row matmuls ---
    y1 = jnp.maximum(jnp.dot(flat, w1, preferred_element_type=jnp.float32) + b1, 0.0)   # (1, h1)
    y2 = jnp.maximum(jnp.dot(y1, w2, preferred_element_type=jnp.float32) + b2, 0.0)     # (1, h2)

    # --- fc3 (scalar output): VPU multiply + cross-lane sum, no MXU round trip ---
    out_ref[...] = jnp.sum(w3 * y2, axis=1, keepdims=True) + b3                          # (1, 1)


def convnet_forward(x, params, *, width, num_filters, filter_size, pool_size, h1, h2):
    nf, fs, ps = num_filters, filter_size, pool_size
    l_conv = width - fs + 1
    l_pooled = math.ceil((width - fs) / ps)
    # PyTorch's .view() requires the flattened size to match MaxPool1d's floor output.
    assert l_conv // ps == l_pooled, "shape config incompatible with the torch module"
    kdim = 5 * fs
    LANES = 128
    assert max(nf, h1, h2, kdim, l_pooled * nf) <= LANES, "config exceeds single-lane-tile layout"

    wconv, bconv, w1, b1, w2, b2, w3, b3 = params

    # ---------- plain-JAX layout plumbing (no compute hoisted): im2col + weight re-layout ----------
    # im2col_t[t, k*5 + c] = x[c, t + k]
    im2col_t = jnp.concatenate([x[:, k:k + l_conv].T for k in range(fs)], axis=1)   # (l_conv, 5*fs)

    # wconv (nf, 5, fs) -> (5*fs, nf) matching im2col column order (k*5 + c)
    wflat_t = jnp.transpose(wconv, (2, 1, 0)).reshape(kdim, nf)

    # kernel flatten order is p*nf + f; torch's is f*l_pooled + p -> permute fc1 columns, transpose
    w1_k = jnp.transpose(w1.reshape(h1, nf, l_pooled), (2, 1, 0)).reshape(l_pooled * nf, h1)
    w2_k = w2.T                                                                       # (h1, h2)

    # ---------- pack all parameters into one (rows, 128) buffer, 8-row-aligned segments ----------
    r_wc = 0
    r_w1 = _round_up(kdim, 8)
    r_w2 = r_w1 + _round_up(l_pooled * nf, 8)
    r_vec = r_w2 + _round_up(h1, 8)
    n_rows = r_vec + 8

    packed = jnp.zeros((n_rows, LANES), jnp.float32)
    packed = packed.at[r_wc:r_wc + kdim, :nf].set(wflat_t)
    packed = packed.at[r_w1:r_w1 + l_pooled * nf, :h1].set(w1_k)
    packed = packed.at[r_w2:r_w2 + h1, :h2].set(w2_k)
    packed = packed.at[r_vec + 0, :nf].set(bconv)
    packed = packed.at[r_vec + 1, :h1].set(b1)
    packed = packed.at[r_vec + 2, :h2].set(b2)
    packed = packed.at[r_vec + 3, :h2].set(w3.reshape(h2))
    packed = packed.at[r_vec + 4, 0].set(b3[0])

    kernel = functools.partial(
        convnet_kernel,
        num_filters=nf, pool_size=ps, l_pooled=l_pooled, h1=h1, h2=h2, kdim=kdim,
        r_wc=r_wc, r_w1=r_w1, r_w2=r_w2, r_vec=r_vec)

    vmem_spec = pl.BlockSpec(memory_space=pltpu.MemorySpace.VMEM)
    out = pl.pallas_call(
        kernel,
        out_shape=jax.ShapeDtypeStruct((1, 1), jnp.float32),
        in_specs=[vmem_spec, vmem_spec],     # 2 DMAs: im2col slab + packed params
        out_specs=vmem_spec,
    )(im2col_t, packed)
    return out.reshape(1)   # matches torch output shape (1,)


def reference_forward(x, params, *, width, num_filters, filter_size, pool_size, h1, h2):
    """Pure-JAX reference mirroring the torch forward (eval mode)."""
    wconv, bconv, w1, b1, w2, b2, w3, b3 = params
    l_conv = width - filter_size + 1
    l_pooled = math.ceil((width - filter_size) / pool_size)
    conv = jnp.stack(
        [jnp.einsum('fck,ck->f', wconv, x[:, t:t + filter_size]) for t in range(l_conv)],
        axis=1) + bconv[:, None]
    conv = jnp.maximum(conv, 0.0)
    pooled = jnp.max(conv[:, :l_pooled * pool_size].reshape(num_filters, l_pooled, pool_size),
                     axis=2)
    flat = pooled.reshape(num_filters * l_pooled)
    y1 = jnp.maximum(w1 @ flat + b1, 0.0)
    y2 = jnp.maximum(w2 @ y1 + b2, 0.0)
    return w3 @ y2 + b3


if __name__ == "__main__":
    # Small, self-consistent config: ceil((16-4)/4)=3 == floor((16-4+1)/4)=3
    width, num_filters, filter_size, pool_size = 16, 8, 4, 4
    hidden = {"first": 32, "second": 16}
    h1, h2 = hidden["first"], hidden["second"]
    l_pooled = math.ceil((width - filter_size) / pool_size)

    key = jax.random.PRNGKey(0)
    ks = jax.random.split(key, 9)
    x = jax.random.normal(ks[0], (5, width), jnp.float32)
    params = (
        jax.random.normal(ks[1], (num_filters, 5, filter_size), jnp.float32) * 0.2,  # conv.weight
        jax.random.normal(ks[2], (num_filters,), jnp.float32) * 0.1,                 # conv.bias
        jax.random.normal(ks[3], (h1, num_filters * l_pooled), jnp.float32) * 0.2,   # fc1.weight
        jax.random.normal(ks[4], (h1,), jnp.float32) * 0.1,                          # fc1.bias
        jax.random.normal(ks[5], (h2, h1), jnp.float32) * 0.2,                       # fc2.weight
        jax.random.normal(ks[6], (h2,), jnp.float32) * 0.1,                          # fc2.bias
        jax.random.normal(ks[7], (1, h2), jnp.float32) * 0.2,                        # fc3.weight
        jax.random.normal(ks[8], (1,), jnp.float32) * 0.1,                           # fc3.bias
    )

    cfg = dict(width=width, num_filters=num_filters, filter_size=filter_size,
               pool_size=pool_size, h1=h1, h2=h2)
    out = convnet_forward(x, params, **cfg)
    jax.block_until_ready(out)

    ref = reference_forward(x, params, **cfg)
    assert jnp.allclose(out, ref, atol=1e-4, rtol=1e-4), (out, ref)
    print("KERNEL_OK")
</pallas_src>

<mosaic_0001>
module attributes {stable_mosaic.version = 11 : i64} {
  func.func @convnet_kernel(%arg0: memref<13x20xf32, #tpu.memory_space<vmem>>, %arg1: memref<88x128xf32, #tpu.memory_space<vmem>>, %arg2: memref<1x1xf32, #tpu.memory_space<vmem>>) attributes {dimension_semantics = [], scalar_prefetch = 0 : i64, scratch_operands = 0 : i64, tpu.core_type = #tpu.core_type<tc>} {
    %c0 = arith.constant 0 : index
    %c0_0 = arith.constant 0 : index
    %0 = vector.load %arg1[%c0, %c0_0] : memref<88x128xf32, #tpu.memory_space<vmem>>, vector<20x8xf32>
    %c24 = arith.constant 24 : index
    %c0_1 = arith.constant 0 : index
    %1 = vector.load %arg1[%c24, %c0_1] : memref<88x128xf32, #tpu.memory_space<vmem>>, vector<24x32xf32>
    %c48 = arith.constant 48 : index
    %c0_2 = arith.constant 0 : index
    %2 = vector.load %arg1[%c48, %c0_2] : memref<88x128xf32, #tpu.memory_space<vmem>>, vector<32x16xf32>
    %c80 = arith.constant 80 : index
    %c0_3 = arith.constant 0 : index
    %3 = vector.load %arg1[%c80, %c0_3] : memref<88x128xf32, #tpu.memory_space<vmem>>, vector<8x128xf32>
    %4 = vector.extract_strided_slice %3 {offsets = [0, 0], sizes = [1, 8], strides = [1, 1]} : vector<8x128xf32> to vector<1x8xf32>
    %5 = vector.extract_strided_slice %3 {offsets = [1, 0], sizes = [1, 32], strides = [1, 1]} : vector<8x128xf32> to vector<1x32xf32>
    %6 = vector.extract_strided_slice %3 {offsets = [2, 0], sizes = [1, 16], strides = [1, 1]} : vector<8x128xf32> to vector<1x16xf32>
    %7 = vector.extract_strided_slice %3 {offsets = [3, 0], sizes = [1, 16], strides = [1, 1]} : vector<8x128xf32> to vector<1x16xf32>
    %8 = vector.extract_strided_slice %3 {offsets = [4, 0], sizes = [1, 1], strides = [1, 1]} : vector<8x128xf32> to vector<1x1xf32>
    %c0_4 = arith.constant 0 : index
    %c0_5 = arith.constant 0 : index
    %9 = vector.load %arg0[%c0_4, %c0_5] : memref<13x20xf32, #tpu.memory_space<vmem>>, vector<13x20xf32>
    %cst = arith.constant dense<0.000000e+00> : vector<13x8xf32>
    %10 = tpu.matmul %9, %0, %cst {dimension_numbers = #tpu.dot_dimension_numbers<[1], [0], [0], [1], [0, 0, 1, 1], [], []>} : vector<13x20xf32>, vector<20x8xf32>, vector<13x8xf32> -> vector<13x8xf32>
    %11 = vector.broadcast %4 : vector<1x8xf32> to vector<13x8xf32>
    %12 = arith.addf %10, %11 : vector<13x8xf32>
    %cst_6 = arith.constant 0.000000e+00 : f32
    %13 = vector.broadcast %cst_6 : f32 to vector<13x8xf32>
    %14 = arith.maximumf %12, %13 : vector<13x8xf32>
    %15 = vector.extract_strided_slice %14 {offsets = [0, 0], sizes = [4, 8], strides = [1, 1]} : vector<13x8xf32> to vector<4x8xf32>
    %cst_7 = arith.constant dense<0xFF800000> : vector<8xf32>
    %16 = vector.multi_reduction <maximumf>, %15, %cst_7 [0] : vector<4x8xf32> to vector<8xf32>
    %17 = vector.shape_cast %16 : vector<8xf32> to vector<1x8xf32>
    %18 = vector.extract_strided_slice %14 {offsets = [4, 0], sizes = [4, 8], strides = [1, 1]} : vector<13x8xf32> to vector<4x8xf32>
    %cst_8 = arith.constant dense<0xFF800000> : vector<8xf32>
    %19 = vector.multi_reduction <maximumf>, %18, %cst_8 [0] : vector<4x8xf32> to vector<8xf32>
    %20 = vector.shape_cast %19 : vector<8xf32> to vector<1x8xf32>
    %21 = vector.extract_strided_slice %14 {offsets = [8, 0], sizes = [4, 8], strides = [1, 1]} : vector<13x8xf32> to vector<4x8xf32>
    %cst_9 = arith.constant dense<0xFF800000> : vector<8xf32>
    %22 = vector.multi_reduction <maximumf>, %21, %cst_9 [0] : vector<4x8xf32> to vector<8xf32>
    %23 = vector.shape_cast %22 : vector<8xf32> to vector<1x8xf32>
    %24 = tpu.concatenate %17, %20, %23 in 1 : vector<1x8xf32>, vector<1x8xf32>, vector<1x8xf32> -> vector<1x24xf32>
    %cst_10 = arith.constant dense<0.000000e+00> : vector<1x32xf32>
    %25 = tpu.matmul %24, %1, %cst_10 {dimension_numbers = #tpu.dot_dimension_numbers<[1], [0], [0], [1], [0, 0, 1, 1], [], []>} : vector<1x24xf32>, vector<24x32xf32>, vector<1x32xf32> -> vector<1x32xf32>
    %26 = arith.addf %25, %5 : vector<1x32xf32>
    %cst_11 = arith.constant 0.000000e+00 : f32
    %27 = vector.broadcast %cst_11 : f32 to vector<1x32xf32>
    %28 = arith.maximumf %26, %27 : vector<1x32xf32>
    %cst_12 = arith.constant dense<0.000000e+00> : vector<1x16xf32>
    %29 = tpu.matmul %28, %2, %cst_12 {dimension_numbers = #tpu.dot_dimension_numbers<[1], [0], [0], [1], [0, 0, 1, 1], [], []>} : vector<1x32xf32>, vector<32x16xf32>, vector<1x16xf32> -> vector<1x16xf32>
    %30 = arith.addf %29, %6 : vector<1x16xf32>
    %cst_13 = arith.constant 0.000000e+00 : f32
    %31 = vector.broadcast %cst_13 : f32 to vector<1x16xf32>
    %32 = arith.maximumf %30, %31 : vector<1x16xf32>
    %33 = arith.mulf %7, %32 : vector<1x16xf32>
    %cst_14 = arith.constant dense<0.000000e+00> : vector<1xf32>
    %34 = vector.multi_reduction <add>, %33, %cst_14 [1] : vector<1x16xf32> to vector<1xf32>
    %35 = vector.shape_cast %34 : vector<1xf32> to vector<1x1xf32>
    %36 = arith.addf %35, %8 : vector<1x1xf32>
    %c0_15 = arith.constant 0 : index
    %c0_16 = arith.constant 0 : index
    %37 = vector.load %arg2[%c0_15, %c0_16] : memref<1x1xf32, #tpu.memory_space<vmem>>, vector<1x1xf32>
    tpu.vector_store %arg2[%c0_15, %c0_16], %36 {strides = array<i32>} : memref<1x1xf32, #tpu.memory_space<vmem>>, vector<1x1xf32>,
    return
  }
}

</mosaic_0001>

<bundles_post_ra>
// kernel: tpu_custom_call.1
= control target key start
LH: loop header
LB: loop body
LE: loop exit
PB: predicated region body
PF: predicated region fallthrough
CT: control target
= control target key end

     0   :  { %7 = vsyncpa [#allocation3], 0  ;;  %s344_s0 = inlined_call_operand.hbm [shape: f32[13,20], index: 0, kind: input, shape index: {}]   ;;  %s345_s1 = inlined_call_operand.hbm [shape: f32[88,128], index: 1, kind: input, shape index: {}]   ;;  %s346_s2 = inlined_call_operand.hbm [shape: f32[1,1], index: 2, kind: output, shape index: {}]  }
   0x1   :  { %8 = vsyncpa [#allocation6], 0 }
   0x2   :  { %9 = vsyncpa [#allocation4], 0  ;;  %s14_s11 = sshll.u32 %s344_s0, 4  ;;  %s305_s12 = smov [#allocation2]   ;;  %s15_s11 = int_to_ptr.hbm [resolvable:$true] %s14_s11 }
   0x3   :  { %s16_s13 = sshll.u32 %s305_s12, 4  ;;  %s27_s16 = sshll.u32 %s345_s1, 4  ;;  %s17_s13 = int_to_ptr.vmem [resolvable:$true] %s16_s13  ;;  %s28_s16 = int_to_ptr.hbm [resolvable:$true] %s27_s16 }
   0x4   :  { %s306_s17 = smov 128   ;;  %s307_s18 = smov 8  }
   0x5   :  { %22 = dma.hbm_to_vmem [thread:$0]  %s15_s11, 256, %s17_s13, [#allocation3], %s306_s17, %s306_s17, %s307_s18  }
   0x6   :  { %s308_s19 = smov [#allocation5]  }
   0x7   :  { %s29_s20 = sshll.u32 %s308_s19, 4  ;;  %s30_s20 = int_to_ptr.vmem [resolvable:$true] %s29_s20 }
   0x8   :  { %35 = dma.hbm_to_vmem [thread:$0]  %s28_s16, 1408, %s30_s20, [#allocation6], %s306_s17, %s306_s17, %s307_s18  }
   0x9   :  { %299 = dma.done.wait [#allocation3], 256  }
   0xa   :  { %300 = vsyncadd [#allocation3], 4294967040 }
   0xb   :  { %301 = dma.done.wait [#allocation6], 1408  }
   0xc   :  { %302 = vsyncadd [#allocation6], 4294965888  ;;  %vm65_vm0 = vcmask 1043456   ;;  %v46_v0 = vld [vmem:[#allocation5 + $0x10] sm:$0xf]  ;;  %v45_v1 = vld [vmem:[#allocation5 + $0x8] sm:$0xff] }
   0xd   :  { %213 = vmatpush.msk.msra.mxu0 %vm65_vm0, %v46_v0  ;;  %218 = vmatpush.msk.msra.mxu3 %vm65_vm0, %v46_v0  ;;  %v44_v2 = vld [vmem:[#allocation5] sm:$0xff]  ;;  %v55_v3 = vld [vmem:[#allocation2] sm:$0xff]  ;;  %vm58_vm1 = vcmask 162816   ;;  %v56_v4 = vld [vmem:[#allocation2 + $0x8] sm:$0x1f]  ;;  %vm94_vm2 = vcmask 60416  }
   0xe   :  { %v334_v5 = vld [vmem:[#allocation5 + $0x50] sm:$0xff]  ;;  %vm102_vm3 = vcmask 64516   ;;  %s309_s0 = smov 16   ;;  %v49_v28 = vld [vmem:[#allocation5 + $0x28] sm:$0xff]  ;;  %v48_v29 = vld [vmem:[#allocation5 + $0x20] sm:$0xff]  ;;  %vm125_vm4 = vcmask 64512  }
   0xf   :  { %83 = vmatpush.msra.mxu0 %v45_v1  ;;  %219 = vmatpush.msra.mxu3 %v45_v1  ;;  %v57_v6 = vperm.slane %v334_v5, 0  ;;  %v47_v30 = vld [vmem:[#allocation5 + $0x18] sm:$0xff]  ;;  %v53_v31 = vld [vmem:[#allocation5 + $0x48] sm:$0xff]  ;;  %vm127_vm5 = vcmask 130048   ;;  %vm132_vm6 = vcmask 195584   ;;  %v52_v42 = vld [vmem:[#allocation5 + $0x40] sm:$0xff] }
  0x10   :  { %149 = vmatpush.msra.mxu1 %v49_v28  ;;  %175 = vmatpush.msra.mxu2 %v53_v31  ;;  %v51_v43 = vld [vmem:[#allocation5 + $0x38] sm:$0xff]  ;;  %v50_v44 = vld [vmem:[#allocation5 + $0x30] sm:$0xff]  ;;  %v130_v45 = vrot.slane %v334_v5, 1  ;;  %vm159_vm7 = vcmask 261120   ;;  %v157_v49 = vrot.slane %v334_v5, 2  ;;  %vm188_vm8 = vcmask 125955  }
  0x11   :  { %84 = vmatpush.msra.mxu0 %v44_v2  ;;  %220 = vmatpush.msra.mxu3 %v44_v2  ;;  %s310_s1 = smov [#allocation7]   ;;  %s202_s24 = sshll.u32 %s346_s2, 4  ;;  %vm193_vm9 = vcmask 3075   ;;  %s203_s24 = int_to_ptr.hbm [resolvable:$true] %s202_s24 }
  0x12   :  { %214 = vmatmul.msk.f32.vlgmr.msra.gmra.mxu0 %vm58_vm1, %v55_v3  ;;  %215 = vmatmul.msk.f32.vlgmr.msra.gmra.mxu3 %vm58_vm1, %v56_v4  ;;  %s200_s21 = sshll.u32 %s310_s1, 4  ;;  %s201_s21 = int_to_ptr.vmem [resolvable:$true] %s200_s21 }
  0x13   :  { %150 = vmatpush.msra.mxu1 %v48_v29  ;;  %176 = vmatpush.msra.mxu2 %v52_v42 }
  0x15   :  { %151 = vmatpush.msra.mxu1 %v47_v30  ;;  %177 = vmatpush.msra.mxu2 %v51_v43 }
  0x17   :  { %178 = vmatpush.msra.mxu2 %v50_v44 }
  0x8f   :  { %v86_v7 = vpop.f32.mrf.mxu0 }
  0x90   :  { %v87_v8 = vadd.f32 %v86_v7, %v57_v6 }
  0x92   :  { %v92_v9 = vmax.f32 %v87_v8, 0.0 }
  0x94   :  { %v95_v10 = vsel %vm94_vm2, %v92_v9, -inf  ;;  %v103_v11 = vsel %vm102_vm3, %v92_v9, -inf }
  0x95   :  { %v104_v12 = vrot.slane %v103_v11, 4  ;;  %v89_v13 = vpop.f32.mrf.mxu3  ;;  %v96_v32 = vrot.slane %v95_v10, 4 }
  0x96   :  { %v90_v14 = vadd.f32 %v89_v13, %v57_v6 }
  0x97   :  { %v105_v15 = vmax.f32 %v103_v11, %v104_v12  ;;  %v97_v33 = vmax.f32 %v95_v10, %v96_v32 }
  0x98   :  { %v93_v16 = vmax.f32 %v90_v14, 0.0 }
  0x99   :  { %v106_v17 = vrot.slane %v105_v15, 2  ;;  %v98_v34 = vrot.slane %v97_v33, 2 }
  0x9a   :  { %v110_v18 = vsel %vm94_vm2, %v93_v16, -inf }
  0x9b   :  { %v111_v19 = vrot.slane %v110_v18, 4  ;;  %v107_v20 = vmax.f32 %v105_v15, %v106_v17  ;;  %v99_v35 = vmax.f32 %v97_v33, %v98_v34 }
  0x9d   :  { %v112_v21 = vmax.f32 %v110_v18, %v111_v19  ;;  %v108_v22 = vrot.slane %v107_v20, 1  ;;  %v100_v37 = vrot.slane %v99_v35, 1 }
  0x9f   :  { %v113_v23 = vrot.slane %v112_v21, 2  ;;  %v109_v24 = vmax.f32 %v107_v20, %v108_v22  ;;  %v101_v38 = vmax.f32 %v99_v35, %v100_v37 }
  0xa1   :  { %118 = vrot.lane.b32.xlu0 %v109_v24, %s307_s18  ;;  %v114_v25 = vmax.f32 %v112_v21, %v113_v23 }
  0xa3   :  { %v115_v26 = vrot.slane %v114_v25, 1 }
  0xa5   :  { %v116_v27 = vmax.f32 %v114_v25, %v115_v26 }
  0xa9   :  { %122 = vrot.lane.b32.xlu0 %v116_v27, %s309_s0 }
 0x113   :  { %v119_v36 = vpop.permute.xlu0 %118 }
 0x114   :  { %v126_v39 = vsel %vm125_vm4, %v101_v38, %v119_v36 }
 0x11b   :  { %v123_v40 = vpop.permute.xlu0 %122 }
 0x11c   :  { %v128_v41 = vsel %vm127_vm5, %v126_v39, %v123_v40 }
 0x11d   :  { %216 = vmatmul.msk.f32.vlgmr.msra.gmra.mxu1 %vm132_vm6, %v128_v41 }
 0x19a   :  { %v153_v46 = vpop.f32.mrf.mxu1 }
 0x19b   :  { %v154_v47 = vadd.f32 %v153_v46, %v130_v45 }
 0x19d   :  { %v156_v48 = vmax.f32 %v154_v47, 0.0 }
 0x19f   :  { %217 = vmatmul.msk.f32.vlgmr.msra.gmra.mxu2 %vm159_vm7, %v156_v48 }
 0x222   :  { %v180_v50 = vpop.f32.mrf.mxu2 }
 0x223   :  { %v181_v51 = vadd.f32 %v180_v50, %v157_v49 }
 0x225   :  { %v183_v52 = vmax.f32 %v181_v51, 0.0 }
 0x227   :  { %v185_v53 = vrot.slane %v183_v52, 5 }
 0x229   :  { %v187_v54 = vmul.f32 %v185_v53, %v334_v5 }
 0x22b   :  { %v189_v55 = vsel %vm188_vm8, %v187_v54, 0.0 }
 0x22c   :  { %190 = vadd.xlane.f32.xlu1 %v189_v55 }
 0x29f   :  { %v191_v56 = vpop.xlane.xlu1 %190 }
 0x2a0   :  { %v192_v57 = vadd.f32 %v191_v56, %v130_v45 }
 0x2a2   :  { %194 = vst.msk [vmem:[#allocation7 - $0x3] sm:$0x8] %vm193_vm9, %v192_v57 }
 0x2a3   :  { %205 = dma.vmem_to_hbm [thread:$0]  %s201_s21, 16, %s203_s24, [#allocation4]  }
 0x2a4   :  { %303 = dma.done.wait [#allocation4], 16  }
 0x2a5   :  { %304 = vsyncadd [#allocation4], 4294967280 }
 0x2a6   :  { %210 = vsyncpa [#allocation3], 1 }
 0x2a7   :  { %211 = vsyncpa [#allocation6], 1 }
 0x2a8   :  { %212 = vsyncpa [#allocation4], 1 }

</bundles_post_ra>
